<compile_context>
chip_gen: v7x
topology: tpu7x:2x2x1
jax: 0.10.0
libtpu: 0.0.40
codegen_flags: <defaults>
</compile_context>

<pallas_src>
import jax
import jax.numpy as jnp
from jax.experimental import pallas as pl
from jax.experimental.pallas import tpu as pltpu


# ----------------------------------------------------------------------------
# Small helpers
# ----------------------------------------------------------------------------
def _round_up(v, m):
    return ((v + m - 1) // m) * m


def _bf16_dot(a, b):
    """MXU matmul: bf16 operands, f32 accumulation."""
    return jnp.dot(a.astype(jnp.bfloat16), b.astype(jnp.bfloat16),
                   preferred_element_type=jnp.float32)


def _gcn(adj, h, w):
    """(adj @ h) @ w, re-associated to adj @ (h @ w) when out_dim < in_dim.

    Exact reassociation (associativity); fewer MACs when the layer shrinks
    the feature dimension.
    """
    if w.shape[1] < w.shape[0]:
        return _bf16_dot(adj, _bf16_dot(h, w))
    return _bf16_dot(_bf16_dot(adj, h), w)


def _dropout_masks(key, n, net_layer_weights):
    """Independent p=0.5 dropout scale-masks (2.0 keep / 0.0 drop) per branch."""
    L = len(net_layer_weights)
    if L <= 1:
        return [], []
    hidden = [w.shape[0] for w in net_layer_weights[:-1]]   # out dims of layers 0..L-2
    keys = jax.random.split(key, 2 * (L - 1))
    dmain = [jax.random.bernoulli(keys[i], 0.5, (n, hidden[i])).astype(jnp.float32) * 2.0
             for i in range(L - 1)]
    dss = [jax.random.bernoulli(keys[(L - 1) + i], 0.5, (n, hidden[i])).astype(jnp.float32) * 2.0
           for i in range(L - 1)]
    return dmain, dss


# ----------------------------------------------------------------------------
# Fused kernels (whole forward in one pallas_call)
# ----------------------------------------------------------------------------
def _make_train_kernel(layer_num):
    """Training-mode fused kernel.

    Refs: adj, x, w_t[0..L-1] (last one 128-padded), wss_t (128-padded),
          drop_main[0..L-2], drop_ss[0..L-2], out (N, Ph + Ps).
    """
    L = layer_num

    def kernel(*refs):
        it = iter(refs)
        adj_ref = next(it)
        x_ref = next(it)
        w_refs = [next(it) for _ in range(L)]
        wss_ref = next(it)
        dmain_refs = [next(it) for _ in range(L - 1)]
        dss_refs = [next(it) for _ in range(L - 1)]
        o_ref = next(it)

        adj = adj_ref[...]
        h = x_ref[...]
        s = h

        # Layers 0..L-2: the pre-dropout layer-0 activation is shared between
        # the two branches; they diverge only through their dropout masks.
        for ln in range(L - 1):
            if ln == 0:
                pre = jnp.maximum(_gcn(adj, h, w_refs[0][...]), 0.0)
                h = pre * dmain_refs[0][...]
                s = pre * dss_refs[0][...]
            else:
                h = jnp.maximum(_gcn(adj, h, w_refs[ln][...]), 0.0) * dmain_refs[ln][...]
                s = jnp.maximum(_gcn(adj, s, w_refs[ln][...]), 0.0) * dss_refs[ln][...]

        # Final layer:
        #   main:  (A @ h) @ W_last  ==  A @ (h @ W_last)
        #   ss  :  (A @ s) @ W_ss    ==  A @ (s @ W_ss)
        # Pack the two A-spmms into ONE MXU dot with a lane-concatenated RHS
        # (both halves are padded to 128-lane multiples -> clean concat and a
        # single lane-dense store).
        u = _bf16_dot(h, w_refs[L - 1][...])      # (N, Ph)
        v = _bf16_dot(s, wss_ref[...])            # (N, Ps)
        o_ref[...] = _bf16_dot(adj, jnp.concatenate([u, v], axis=-1)
                               ).astype(o_ref.dtype)

    return kernel


def _make_eval_kernel(layer_num):
    """Eval-mode (val_test=True) fused kernel: main branch only, no dropout."""
    L = layer_num

    def kernel(*refs):
        adj_ref, x_ref = refs[0], refs[1]
        w_refs = refs[2:2 + L]
        o_ref = refs[2 + L]

        adj = adj_ref[...]
        h = x_ref[...]
        for ln in range(L - 1):
            h = jnp.maximum(_gcn(adj, h, w_refs[ln][...]), 0.0)
        o_ref[...] = _bf16_dot(adj, _bf16_dot(h, w_refs[L - 1][...])
                               ).astype(o_ref.dtype)

    return kernel


# ----------------------------------------------------------------------------
# net_gcn_multitask forward
# ----------------------------------------------------------------------------
def net_gcn_multitask_forward(x, adj, net_layer_weights, ss_classifier_weight,
                              val_test=False, rng_key=None):
    """
    net_layer_weights: list of (out_features, in_features) arrays (nn.Linear).
    ss_classifier_weight: (ss_dim, embedding_dim[-2]).
    Returns (x_out, x_ss) exactly like the PyTorch module.
    """
    L = len(net_layer_weights)
    n = adj.shape[0]
    out_dim = net_layer_weights[-1].shape[0]
    ss_dim = ss_classifier_weight.shape[0]
    ph = _round_up(out_dim, 128)
    ps = _round_up(ss_dim, 128)

    # Pre-transpose Linear weights to (in, out) once; zero-pad the weights
    # feeding the final packed spmm so the HBM writeback is lane-dense.
    w_t = [jnp.asarray(w).T for w in net_layer_weights]
    w_last_pad = jnp.zeros((w_t[-1].shape[0], ph), jnp.float32).at[:, :out_dim].set(w_t[-1])
    wss_t = jnp.asarray(ss_classifier_weight).T
    wss_pad = jnp.zeros((wss_t.shape[0], ps), jnp.float32).at[:, :ss_dim].set(wss_t)

    # bf16 MXU operands (f32 accumulation happens in-kernel).
    adj_bf = adj.astype(jnp.bfloat16)
    x_bf = x.astype(jnp.bfloat16)
    w_bf = [w.astype(jnp.bfloat16) for w in w_t[:-1]] + [w_last_pad.astype(jnp.bfloat16)]
    wss_bf = wss_pad.astype(jnp.bfloat16)

    vmem = pl.BlockSpec(memory_space=pltpu.MemorySpace.VMEM)

    if val_test:
        inputs = [adj_bf, x_bf] + w_bf
        out = pl.pallas_call(
            _make_eval_kernel(L),
            out_shape=jax.ShapeDtypeStruct((n, ph), jnp.float32),
            in_specs=[vmem] * len(inputs),
            out_specs=vmem,
        )(*inputs)
        return out[:, :out_dim], x

    if rng_key is None:
        rng_key = jax.random.PRNGKey(0)
    dmain, dss = _dropout_masks(rng_key, n, net_layer_weights)

    inputs = [adj_bf, x_bf] + w_bf + [wss_bf] + dmain + dss
    out = pl.pallas_call(
        _make_train_kernel(L),
        out_shape=jax.ShapeDtypeStruct((n, ph + ps), jnp.float32),
        in_specs=[vmem] * len(inputs),
        out_specs=vmem,
    )(*inputs)
    return out[:, :out_dim], out[:, ph:ph + ss_dim]


# ----------------------------------------------------------------------------
# Pure-JAX f32 reference (same dropout masks) for a correctness check
# ----------------------------------------------------------------------------
def _reference_forward(x, adj, net_layer_weights, ss_classifier_weight, dmain, dss):
    L = len(net_layer_weights)
    h = x
    for ln in range(L):
        h = adj @ h
        h = h @ net_layer_weights[ln].T
        if ln == L - 1:
            break
        h = jnp.maximum(h, 0.0) * dmain[ln]
    s = x
    for ln in range(L):
        s = adj @ s
        if ln == L - 1:
            break
        s = s @ net_layer_weights[ln].T
        s = jnp.maximum(s, 0.0) * dss[ln]
    s = s @ ss_classifier_weight.T
    return h, s


# ----------------------------------------------------------------------------
# Main
# ----------------------------------------------------------------------------
if __name__ == "__main__":
    # embedding_dim = [32, 32, 16], ss_dim = 8  ->  layer_num = 2
    embedding_dim = [32, 32, 16]
    ss_dim = 8
    N = 64  # number of graph nodes

    key = jax.random.PRNGKey(0)
    k_x, k_adj, k_w0, k_w1, k_wss, k_drop = jax.random.split(key, 6)

    x = jax.random.normal(k_x, (N, embedding_dim[0]), dtype=jnp.float32)

    # symmetric, row-normalized dense "sparse" adjacency
    a = (jax.random.uniform(k_adj, (N, N)) < 0.1).astype(jnp.float32)
    a = jnp.minimum(a + a.T + jnp.eye(N, dtype=jnp.float32), 1.0)
    adj = a / jnp.sum(a, axis=1, keepdims=True)

    # nn.Linear(in, out, bias=False) weight has shape (out, in)
    w0 = jax.random.normal(k_w0, (embedding_dim[1], embedding_dim[0]),
                           dtype=jnp.float32) * 0.1
    w1 = jax.random.normal(k_w1, (embedding_dim[2], embedding_dim[1]),
                           dtype=jnp.float32) * 0.1
    w_ss = jax.random.normal(k_wss, (ss_dim, embedding_dim[-2]),
                             dtype=jnp.float32) * 0.1
    weights = [w0, w1]

    fwd = jax.jit(net_gcn_multitask_forward, static_argnames=("val_test",))

    # --- training mode (val_test=False): exercises the fully fused kernel ---
    out_x, out_x_ss = fwd(x, adj, weights, w_ss, val_test=False, rng_key=k_drop)
    out_x = jax.block_until_ready(out_x)
    out_x_ss = jax.block_until_ready(out_x_ss)
    assert out_x.shape == (N, embedding_dim[-1])
    assert out_x_ss.shape == (N, ss_dim)

    # correctness vs. an f32 pure-JAX reference using the identical masks
    # (loose tolerance: kernel feeds the MXU bf16 operands).
    dmain, dss = _dropout_masks(k_drop, N, weights)
    ref_x, ref_x_ss = _reference_forward(x, adj, weights, w_ss, dmain, dss)
    assert jnp.allclose(out_x, ref_x, rtol=2e-1, atol=2e-2)
    assert jnp.allclose(out_x_ss, ref_x_ss, rtol=2e-1, atol=2e-2)

    # --- eval mode (val_test=True): main branch only, x_ss passes through ---
    ev_x, ev_x_ss = fwd(x, adj, weights, w_ss, val_test=True)
    ev_x = jax.block_until_ready(ev_x)
    assert ev_x.shape == (N, embedding_dim[-1])
    assert ev_x_ss.shape == (N, embedding_dim[0])

    print("KERNEL_OK")
</pallas_src>

<mosaic_0001>
module attributes {stable_mosaic.version = 11 : i64} {
  func.func @kernel(%arg0: memref<64x64xbf16, #tpu.memory_space<vmem>>, %arg1: memref<64x32xbf16, #tpu.memory_space<vmem>>, %arg2: memref<32x32xbf16, #tpu.memory_space<vmem>>, %arg3: memref<32x128xbf16, #tpu.memory_space<vmem>>, %arg4: memref<32x128xbf16, #tpu.memory_space<vmem>>, %arg5: memref<64x32xf32, #tpu.memory_space<vmem>>, %arg6: memref<64x32xf32, #tpu.memory_space<vmem>>, %arg7: memref<64x256xf32, #tpu.memory_space<vmem>>) attributes {dimension_semantics = [], scalar_prefetch = 0 : i64, scratch_operands = 0 : i64, tpu.core_type = #tpu.core_type<tc>} {
    %c0 = arith.constant 0 : index
    %c0_0 = arith.constant 0 : index
    %0 = vector.load %arg0[%c0, %c0_0] : memref<64x64xbf16, #tpu.memory_space<vmem>>, vector<64x64xbf16>
    %c0_1 = arith.constant 0 : index
    %c0_2 = arith.constant 0 : index
    %1 = vector.load %arg1[%c0_1, %c0_2] : memref<64x32xbf16, #tpu.memory_space<vmem>>, vector<64x32xbf16>
    %c0_3 = arith.constant 0 : index
    %c0_4 = arith.constant 0 : index
    %2 = vector.load %arg2[%c0_3, %c0_4] : memref<32x32xbf16, #tpu.memory_space<vmem>>, vector<32x32xbf16>
    %cst = arith.constant dense<0.000000e+00> : vector<64x32xf32>
    %3 = tpu.matmul %0, %1, %cst {dimension_numbers = #tpu.dot_dimension_numbers<[1], [0], [0], [1], [0, 0, 1, 1], [], []>} : vector<64x64xbf16>, vector<64x32xbf16>, vector<64x32xf32> -> vector<64x32xf32>
    %4 = arith.truncf %3 : vector<64x32xf32> to vector<64x32xbf16>
    %cst_5 = arith.constant dense<0.000000e+00> : vector<64x32xf32>
    %5 = tpu.matmul %4, %2, %cst_5 {dimension_numbers = #tpu.dot_dimension_numbers<[1], [0], [0], [1], [0, 0, 1, 1], [], []>} : vector<64x32xbf16>, vector<32x32xbf16>, vector<64x32xf32> -> vector<64x32xf32>
    %cst_6 = arith.constant 0.000000e+00 : f32
    %6 = vector.broadcast %cst_6 : f32 to vector<64x32xf32>
    %7 = arith.maximumf %5, %6 : vector<64x32xf32>
    %c0_7 = arith.constant 0 : index
    %c0_8 = arith.constant 0 : index
    %8 = vector.load %arg5[%c0_7, %c0_8] : memref<64x32xf32, #tpu.memory_space<vmem>>, vector<64x32xf32>
    %9 = arith.mulf %7, %8 : vector<64x32xf32>
    %c0_9 = arith.constant 0 : index
    %c0_10 = arith.constant 0 : index
    %10 = vector.load %arg6[%c0_9, %c0_10] : memref<64x32xf32, #tpu.memory_space<vmem>>, vector<64x32xf32>
    %11 = arith.mulf %7, %10 : vector<64x32xf32>
    %c0_11 = arith.constant 0 : index
    %c0_12 = arith.constant 0 : index
    %12 = vector.load %arg3[%c0_11, %c0_12] : memref<32x128xbf16, #tpu.memory_space<vmem>>, vector<32x128xbf16>
    %13 = arith.truncf %9 : vector<64x32xf32> to vector<64x32xbf16>
    %cst_13 = arith.constant dense<0.000000e+00> : vector<64x128xf32>
    %14 = tpu.matmul %13, %12, %cst_13 {dimension_numbers = #tpu.dot_dimension_numbers<[1], [0], [0], [1], [0, 0, 1, 1], [], []>} : vector<64x32xbf16>, vector<32x128xbf16>, vector<64x128xf32> -> vector<64x128xf32>
    %c0_14 = arith.constant 0 : index
    %c0_15 = arith.constant 0 : index
    %15 = vector.load %arg4[%c0_14, %c0_15] : memref<32x128xbf16, #tpu.memory_space<vmem>>, vector<32x128xbf16>
    %16 = arith.truncf %11 : vector<64x32xf32> to vector<64x32xbf16>
    %cst_16 = arith.constant dense<0.000000e+00> : vector<64x128xf32>
    %17 = tpu.matmul %16, %15, %cst_16 {dimension_numbers = #tpu.dot_dimension_numbers<[1], [0], [0], [1], [0, 0, 1, 1], [], []>} : vector<64x32xbf16>, vector<32x128xbf16>, vector<64x128xf32> -> vector<64x128xf32>
    %18 = tpu.concatenate %14, %17 in 1 : vector<64x128xf32>, vector<64x128xf32> -> vector<64x256xf32>
    %19 = arith.truncf %18 : vector<64x256xf32> to vector<64x256xbf16>
    %cst_17 = arith.constant dense<0.000000e+00> : vector<64x256xf32>
    %20 = tpu.matmul %0, %19, %cst_17 {dimension_numbers = #tpu.dot_dimension_numbers<[1], [0], [0], [1], [0, 0, 1, 1], [], []>} : vector<64x64xbf16>, vector<64x256xbf16>, vector<64x256xf32> -> vector<64x256xf32>
    %c0_18 = arith.constant 0 : index
    %c0_19 = arith.constant 0 : index
    %21 = vector.load %arg7[%c0_18, %c0_19] : memref<64x256xf32, #tpu.memory_space<vmem>>, vector<64x256xf32>
    tpu.vector_store %arg7[%c0_18, %c0_19], %20 {strides = array<i32>} : memref<64x256xf32, #tpu.memory_space<vmem>>, vector<64x256xf32>,
    return
  }
}

</mosaic_0001>

<bundles_post_ra>
// kernel: net_gcn_multitask_forward.1
= control target key start
LH: loop header
LB: loop body
LE: loop exit
PB: predicated region body
PF: predicated region fallthrough
CT: control target
= control target key end

     0   :  { %vm91_vm0 = vcmask 523264   ;;  %vm185_vm1 = vcmask 261120   ;;  %s940_s1 = inlined_call_operand.vmem [shape: bf16[64,32], index: 1, kind: input, shape index: {}]   ;;  %s941_s0 = inlined_call_operand.vmem [shape: bf16[64,64], index: 0, kind: input, shape index: {}]   ;;  %s942_s2 = inlined_call_operand.vmem [shape: bf16[32,32], index: 2, kind: input, shape index: {}]   ;;  %s943_s4 = inlined_call_operand.vmem [shape: bf16[32,128], index: 4, kind: input, shape index: {}]   ;;  %s944_s3 = inlined_call_operand.vmem [shape: bf16[32,128], index: 3, kind: input, shape index: {}]   ;;  %s945_s5 = inlined_call_operand.vmem [shape: f32[64,32], index: 5, kind: input, shape index: {}]   ;;  %s946_s6 = inlined_call_operand.vmem [shape: f32[64,32], index: 6, kind: input, shape index: {}]   ;;  %s947_s7 = inlined_call_operand.vmem [shape: f32[64,256], index: 7, kind: output, shape index: {}]  }
   0x1   :  { %v711_v0 = vld [vmem:[%s940_s1] sm:$0xff]   ;;  %v712_v1 = vld [vmem:[%s940_s1 + $0x8] sm:$0xff]   ;;  %v713_v2 = vld [vmem:[%s940_s1 + $0x10] sm:$0xff]  }
   0x2   :  { %658 = vmatprep.subr.bf16.mxu0 %v711_v0  ;;  %v778_v3 = vld [vmem:[%s941_s0] sm:$0xff]   ;;  %v714_v4 = vld [vmem:[%s940_s1 + $0x18] sm:$0xff]   ;;  %v791_v6 = vld [vmem:[%s941_s0 + $0x8] sm:$0xff]  }
   0x3   :  { %659 = vmatpush3.bf16.msra.mxu0 %v711_v0  ;;  %666 = vmatprep.mubr.msk.bf16.mxu0 %vm91_vm0, %v778_v3  ;;  %v719_v5 = vld [vmem:[%s942_s2] sm:$0xff]   ;;  %v796_v7 = vld [vmem:[%s941_s0 + $0x10] sm:$0xff]   ;;  %v720_v8 = vld [vmem:[%s942_s2 + $0x8] sm:$0xff]  }
   0x4   :  { %660 = vmatprep.subr.bf16.mxu0 %v712_v1  ;;  %v808_v9 = vld [vmem:[%s941_s0 + $0x18] sm:$0xff]   ;;  %v721_v10 = vld [vmem:[%s943_s4] sm:$0xff]   ;;  %v723_v24 = vld [vmem:[%s943_s4 + $0x8] sm:$0xff]  }
   0x5   :  { %v722_v23 = vld [vmem:[%s944_s3] sm:$0xff]   ;;  %v724_v25 = vld [vmem:[%s944_s3 + $0x8] sm:$0xff]   ;;  %v273_v28 = vld [vmem:[%s945_s5 + $0x10] sm:$0xff] }
   0x6   :  { %686 = vmatprep.subr.bf16.mxu1 %v722_v23  ;;  %v289_v29 = vld [vmem:[%s946_s6 + $0x10] sm:$0xff]  ;;  %v271_v32 = vld [vmem:[%s945_s5] sm:$0xff]  ;;  %v274_v34 = vld [vmem:[%s945_s5 + $0x18] sm:$0xff] }
   0x7   :  { %661 = vmatpush3.bf16.msra.mxu0 %v712_v1  ;;  %687 = vmatpush3.bf16.msra.mxu1 %v722_v23  ;;  %v290_v35 = vld [vmem:[%s946_s6 + $0x18] sm:$0xff]  ;;  %v287_v36 = vld [vmem:[%s946_s6] sm:$0xff]  ;;  %v272_v39 = vld [vmem:[%s945_s5 + $0x8] sm:$0xff] }
   0x8   :  { %662 = vmatprep.subr.bf16.mxu0 %v713_v2  ;;  %688 = vmatprep.subr.bf16.mxu1 %v724_v25  ;;  %v288_v40 = vld [vmem:[%s946_s6 + $0x8] sm:$0xff]  ;;  %v277_v56 = vld [vmem:[%s945_s5 + $0x30] sm:$0xff]  ;;  %v275_v60 = vld [vmem:[%s945_s5 + $0x20] sm:$0xff] }
   0x9   :  { %v293_v57 = vld [vmem:[%s946_s6 + $0x30] sm:$0xff]  ;;  %v278_v62 = vld [vmem:[%s945_s5 + $0x38] sm:$0xff]  ;;  %v291_v0 = vld [vmem:[%s946_s6 + $0x20] sm:$0xff] }
   0xa   :  { %v294_v63 = vld [vmem:[%s946_s6 + $0x38] sm:$0xff] }
   0xb   :  { %663 = vmatpush3.bf16.msra.mxu0 %v713_v2  ;;  %689 = vmatpush3.bf16.msra.mxu1 %v724_v25 }
   0xc   :  { %664 = vmatprep.subr.bf16.mxu0 %v714_v4 }
   0xf   :  { %665 = vmatpush3.bf16.msra.mxu0 %v714_v4  ;;  %v276_v4 = vld [vmem:[%s945_s5 + $0x28] sm:$0xff] }
  0x10   :  { %674 = vmatprep.subr.bf16.mxu0 %v719_v5 }
  0x12   :  { %667 = vmatmul.mubr.msk.bf16.vlgmr.msra.gmra.mrb[0].mxu0 %vm91_vm0, %v791_v6 }
  0x13   :  { %670 = vmatprep.mubr.msk.bf16.mxu0 %vm91_vm0, %v796_v7  ;;  %675 = vmatpush3.bf16.msra.mxu0 %v719_v5  ;;  %v292_v5 = vld [vmem:[%s946_s6 + $0x28] sm:$0xff] }
  0x14   :  { %676 = vmatprep.subr.bf16.mxu0 %v720_v8 }
  0x17   :  { %677 = vmatpush3.bf16.msra.mxu0 %v720_v8 }
  0x18   :  { %698 = vmatprep.subr.bf16.mxu0 %v721_v10 }
  0x1a   :  { %671 = vmatmul.mubr.msk.bf16.gmra.mrb[4].mxu0 %vm91_vm0, %v808_v9 }
  0xe5   :  { %v668_v11 = vpop.f32.mrb[0].mxu0 }
  0xe6   :  { %v138_v12 = vpop.f32.mrb[1].mxu0 }
  0xe7   :  { %v669_v13 = vpop.f32.mrb[2].mxu0 }
  0xe8   :  { %v170_v14 = vpack.c.bf16 %v669_v13, %v668_v11  ;;  %v141_v15 = vpop.f32.mrb[3].mxu0 }
  0xe9   :  { %v169_v16 = vpack.c.bf16 %v141_v15, %v138_v12 }
  0xeb   :  { %678 = vmatprep.mubr.msk.bf16.mxu0 %vm185_vm1, %v169_v16 }
  0xec   :  { %679 = vmatmul.mubr.msk.bf16.vlgmr.msra.gmra.mrb[8].mxu0 %vm185_vm1, %v170_v14 }
  0xed   :  { %v672_v17 = vpop.f32.mrb[4].mxu0  ;;  %699 = vmatpush3.bf16.msra.mxu0 %v721_v10 }
  0xee   :  { %v154_v18 = vpop.f32.mrb[5].mxu0  ;;  %700 = vmatprep.subr.bf16.mxu0 %v723_v24 }
  0xef   :  { %v673_v19 = vpop.f32.mrb[6].mxu0 }
  0xf0   :  { %v172_v20 = vpack.c.bf16 %v673_v19, %v672_v17  ;;  %v157_v21 = vpop.f32.mrb[7].mxu0 }
  0xf1   :  { %v171_v22 = vpack.c.bf16 %v157_v21, %v154_v18  ;;  %701 = vmatpush3.bf16.msra.mxu0 %v723_v24 }
  0xf3   :  { %682 = vmatprep.mubr.msk.bf16.mxu0 %vm185_vm1, %v171_v22  ;;  %v725_v22 = vmov 0  }
  0xf4   :  { %683 = vmatmul.mubr.msk.bf16.gmra.mrb[12].mxu0 %vm185_vm1, %v172_v20 }
 0x1bf   :  { %v680_v26 = vpop.f32.mrb[8].mxu0 }
 0x1c0   :  { %v265_v27 = vmax.f32 %v680_v26, 0.0  ;;  %v232_v30 = vpop.f32.mrb[9].mxu0 }
 0x1c1   :  { %v263_v31 = vmax.f32 %v232_v30, 0.0  ;;  %v681_v33 = vpop.f32.mrb[10].mxu0 }
 0x1c2   :  { %v266_v37 = vmax.f32 %v681_v33, 0.0  ;;  %v235_v38 = vpop.f32.mrb[11].mxu0  ;;  %v281_v42 = vmul.f32 %v273_v28, %v265_v27  ;;  %v297_v43 = vmul.f32 %v289_v29, %v265_v27 }
 0x1c3   :  { %v264_v41 = vmax.f32 %v235_v38, 0.0  ;;  %v279_v46 = vmul.f32 %v271_v32, %v263_v31  ;;  %v295_v47 = vmul.f32 %v287_v36, %v263_v31 }
 0x1c4   :  { %v282_v44 = vmul.f32 %v274_v34, %v266_v37  ;;  %v298_v45 = vmul.f32 %v290_v35, %v266_v37 }
 0x1c5   :  { %v280_v48 = vmul.f32 %v272_v39, %v264_v41  ;;  %v296_v49 = vmul.f32 %v288_v40, %v264_v41 }
 0x1c6   :  { %v308_v50 = vpack.c.bf16 %v282_v44, %v281_v42  ;;  %v405_v51 = vpack.c.bf16 %v298_v45, %v297_v43 }
 0x1c7   :  { %v404_v52 = vpack.c.bf16 %v296_v49, %v295_v47  ;;  %v684_v53 = vpop.f32.mrb[12].mxu0  ;;  %v307_v54 = vpack.c.bf16 %v280_v48, %v279_v46 }
 0x1c8   :  { %v269_v55 = vmax.f32 %v684_v53, 0.0  ;;  %v248_v58 = vpop.f32.mrb[13].mxu0 }
 0x1c9   :  { %v267_v59 = vmax.f32 %v248_v58, 0.0  ;;  %v685_v61 = vpop.f32.mrb[14].mxu0  ;;  %690 = vmatprep.mubr.msk.bf16.mxu1 %vm185_vm1, %v307_v54  ;;  %702 = vmatprep.mubr.msk.bf16.mxu0 %vm185_vm1, %v404_v52 }
 0x1ca   :  { %v270_v1 = vmax.f32 %v685_v61, 0.0  ;;  %v251_v2 = vpop.f32.mrb[15].mxu0  ;;  %691 = vmatmul.mubr.msk.bf16.vlgmr.msra.gmra.mrb[0].mxu1 %vm185_vm1, %v308_v50  ;;  %703 = vmatmul.mubr.msk.bf16.vlgmr.msra.gmra.mrb[16].mxu0 %vm185_vm1, %v405_v51  ;;  %v285_v10 = vmul.f32 %v277_v56, %v269_v55  ;;  %v301_v11 = vmul.f32 %v293_v57, %v269_v55 }
 0x1cb   :  { %v268_v8 = vmax.f32 %v251_v2, 0.0  ;;  %v283_v14 = vmul.f32 %v275_v60, %v267_v59  ;;  %v299_v15 = vmul.f32 %v291_v0, %v267_v59 }
 0x1cc   :  { %v286_v12 = vmul.f32 %v278_v62, %v270_v1  ;;  %v302_v13 = vmul.f32 %v294_v63, %v270_v1 }
 0x1cd   :  { %v284_v16 = vmul.f32 %v276_v4, %v268_v8  ;;  %v300_v17 = vmul.f32 %v292_v5, %v268_v8 }
 0x1ce   :  { %v310_v18 = vpack.c.bf16 %v286_v12, %v285_v10  ;;  %v407_v19 = vpack.c.bf16 %v302_v13, %v301_v11 }
 0x1cf   :  { %v309_v20 = vpack.c.bf16 %v284_v16, %v283_v14  ;;  %v406_v21 = vpack.c.bf16 %v300_v17, %v299_v15 }
 0x1d1   :  { %694 = vmatprep.mubr.msk.bf16.mxu1 %vm185_vm1, %v309_v20  ;;  %706 = vmatprep.mubr.msk.bf16.mxu0 %vm185_vm1, %v406_v21 }
 0x1d2   :  { %695 = vmatmul.mubr.msk.bf16.gmra.mrb[4].mxu1 %vm185_vm1, %v310_v18  ;;  %707 = vmatmul.mubr.msk.bf16.gmra.mrb[20].mxu0 %vm185_vm1, %v407_v19 }
 0x1d3   :  { %537 = vmatprep.mubr.bf16.mxu1 %v725_v22 }
 0x29d   :  { %v692_v23 = vpop.f32.mrb[0].mxu1  ;;  %v704_v24 = vpop.f32.mrb[16].mxu0 }
 0x29e   :  { %v369_v25 = vpop.f32.mrb[1].mxu1  ;;  %v466_v26 = vpop.f32.mrb[17].mxu0 }
 0x29f   :  { %v693_v27 = vpop.f32.mrb[2].mxu1  ;;  %v705_v28 = vpop.f32.mrb[18].mxu0 }
 0x2a0   :  { %v499_v29 = vpack.c.bf16 %v693_v27, %v692_v23  ;;  %v500_v30 = vpack.c.bf16 %v705_v28, %v704_v24  ;;  %v372_v31 = vpop.f32.mrb[3].mxu1  ;;  %v469_v32 = vpop.f32.mrb[19].mxu0 }
 0x2a1   :  { %v497_v33 = vpack.c.bf16 %v372_v31, %v369_v25  ;;  %v498_v34 = vpack.c.bf16 %v469_v32, %v466_v26 }
 0x2a3   :  { %505 = vmatprep.subr.bf16.mxu1 %v498_v34 }
 0x2a4   :  { %506 = vmatpush1.bf16.msra.mxu1 %v497_v33 }
 0x2a5   :  { %v696_v35 = vpop.f32.mrb[4].mxu1  ;;  %v708_v36 = vpop.f32.mrb[20].mxu0  ;;  %507 = vmatprep.subr.bf16.mxu1 %v500_v30 }
 0x2a6   :  { %v385_v37 = vpop.f32.mrb[5].mxu1  ;;  %v482_v38 = vpop.f32.mrb[21].mxu0 }
 0x2a7   :  { %v697_v39 = vpop.f32.mrb[6].mxu1  ;;  %v709_v40 = vpop.f32.mrb[22].mxu0 }
 0x2a8   :  { %v503_v41 = vpack.c.bf16 %v697_v39, %v696_v35  ;;  %v504_v42 = vpack.c.bf16 %v709_v40, %v708_v36  ;;  %v388_v43 = vpop.f32.mrb[7].mxu1  ;;  %v485_v44 = vpop.f32.mrb[23].mxu0  ;;  %508 = vmatpush1.bf16.msra.mxu1 %v499_v29 }
 0x2a9   :  { %v501_v45 = vpack.c.bf16 %v388_v43, %v385_v37  ;;  %v502_v46 = vpack.c.bf16 %v485_v44, %v482_v38 }
 0x2ab   :  { %509 = vmatprep.subr.bf16.mxu1 %v502_v46 }
 0x2ac   :  { %510 = vmatpush1.bf16.msra.mxu1 %v501_v45 }
 0x2ad   :  { %511 = vmatprep.subr.bf16.mxu1 %v504_v42 }
 0x2b0   :  { %512 = vmatpush1.bf16.msra.mxu1 %v503_v41 }
 0x2b3   :  { %628 = vmatmul.mubr.msk.bf16.vlgmr.msra.gmra.mrb[8].mxu1 %vm91_vm0, %v778_v3 }
 0x2b4   :  { %547 = vmatprep.mubr.bf16.mxu1 %v725_v22 }
 0x2bb   :  { %629 = vmatmul.mubr.msk.bf16.gmra.mrb[12].mxu1 %vm91_vm0, %v791_v6 }
 0x2bc   :  { %557 = vmatprep.mubr.bf16.mxu1 %v725_v22 }
 0x2c3   :  { %630 = vmatmul.mubr.msk.bf16.gmra.mrb[16].mxu1 %vm91_vm0, %v796_v7 }
 0x2c4   :  { %567 = vmatprep.mubr.bf16.mxu1 %v725_v22 }
 0x2cb   :  { %631 = vmatmul.mubr.msk.bf16.gmra.mrb[20].mxu1 %vm91_vm0, %v808_v9 }
 0x386   :  { %v539_v47 = vpop.f32.mrb[8].mxu1 }
 0x387   :  { %578 = vst [vmem:[%s947_s7] sm:$0xff] %v539_v47  ;;  %v541_v48 = vpop.f32.mrb[9].mxu1 }
 0x388   :  { %579 = vst [vmem:[%s947_s7 + $0x8] sm:$0xff] %v541_v48  ;;  %v543_v3 = vpop.f32.mrb[10].mxu1 }
 0x389   :  { %580 = vst [vmem:[%s947_s7 + $0x10] sm:$0xff] %v543_v3  ;;  %v545_v6 = vpop.f32.mrb[11].mxu1 }
 0x38a   :  { %581 = vst [vmem:[%s947_s7 + $0x18] sm:$0xff] %v545_v6 }
 0x38e   :  { %v549_v7 = vpop.f32.mrb[12].mxu1 }
 0x38f   :  { %582 = vst [vmem:[%s947_s7 + $0x20] sm:$0xff] %v549_v7  ;;  %v551_v9 = vpop.f32.mrb[13].mxu1 }
 0x390   :  { %583 = vst [vmem:[%s947_s7 + $0x28] sm:$0xff] %v551_v9  ;;  %v553_v49 = vpop.f32.mrb[14].mxu1 }
 0x391   :  { %584 = vst [vmem:[%s947_s7 + $0x30] sm:$0xff] %v553_v49  ;;  %v555_v50 = vpop.f32.mrb[15].mxu1 }
 0x392   :  { %585 = vst [vmem:[%s947_s7 + $0x38] sm:$0xff] %v555_v50 }
 0x396   :  { %v559_v51 = vpop.f32.mrb[16].mxu1 }
 0x397   :  { %586 = vst [vmem:[%s947_s7 + $0x40] sm:$0xff] %v559_v51  ;;  %v561_v52 = vpop.f32.mrb[17].mxu1 }
 0x398   :  { %587 = vst [vmem:[%s947_s7 + $0x48] sm:$0xff] %v561_v52  ;;  %v563_v53 = vpop.f32.mrb[18].mxu1 }
 0x399   :  { %588 = vst [vmem:[%s947_s7 + $0x50] sm:$0xff] %v563_v53  ;;  %v565_v54 = vpop.f32.mrb[19].mxu1 }
 0x39a   :  { %589 = vst [vmem:[%s947_s7 + $0x58] sm:$0xff] %v565_v54 }
 0x39e   :  { %v569_v55 = vpop.f32.mrb[20].mxu1 }
 0x39f   :  { %590 = vst [vmem:[%s947_s7 + $0x60] sm:$0xff] %v569_v55  ;;  %v571_v56 = vpop.f32.mrb[21].mxu1 }
 0x3a0   :  { %591 = vst [vmem:[%s947_s7 + $0x68] sm:$0xff] %v571_v56  ;;  %v573_v57 = vpop.f32.mrb[22].mxu1 }
 0x3a1   :  { %592 = vst [vmem:[%s947_s7 + $0x70] sm:$0xff] %v573_v57  ;;  %v575_v58 = vpop.f32.mrb[23].mxu1 }
 0x3a2   :  { %593 = vst [vmem:[%s947_s7 + $0x78] sm:$0xff] %v575_v58 }

</bundles_post_ra>
